<compile_context>
chip_gen: v7x
topology: tpu7x:2x2x1
jax: 0.10.0
libtpu: 0.0.40
codegen_flags: <defaults>
</compile_context>

<pallas_src>
import functools

import jax
import jax.numpy as jnp
from jax import lax
from jax.experimental import pallas as pl
from jax.experimental.pallas import tpu as pltpu

LN_EPS = 1e-5  # PyTorch nn.LayerNorm default


def _adv_gen_kernel(x_ref, w1_ref, b1_ref, w2_ref, b2_ref, g_ref, be_ref,
                    w3_ref, b3_ref, w4_ref, b4_ref, out_ref, *, mxu_dtype):
    x = x_ref[...].astype(jnp.float32)                                  # (TM, H)

    def mm(a, w_ref, b_ref):
        w = w_ref[...]
        if mxu_dtype is not None:            # bf16 MXU feed on v6e/v7x (opt-in)
            a = a.astype(mxu_dtype)
            w = w.astype(mxu_dtype)
        return (jnp.dot(a, w, preferred_element_type=jnp.float32)
                + b_ref[...].astype(jnp.float32))

    # --- encoder: Linear -> ReLU -> Dropout(eval: identity) -> Linear -> LN ----
    # TODO(synk): for very large H * block_rows the (TM, 2H) f32 intermediate
    # should be K-tiled (column blocks of w1/w2) to stay out of the spill regime.
    h = jnp.maximum(mm(x, w1_ref, b1_ref), 0.0)
    e = mm(h, w2_ref, b2_ref)

    # One-pass LayerNorm statistics: two independent reductions, no serial chain.
    mu = jnp.mean(e, axis=-1, keepdims=True)
    ms = jnp.mean(e * e, axis=-1, keepdims=True)
    var = ms - mu * mu
    enc = (e - mu) * lax.rsqrt(var + LN_EPS) * g_ref[...] + be_ref[...]

    # --- adversarial_head: Linear -> Tanh -> Linear -----------------------------
    a = jnp.tanh(mm(enc, w3_ref, b3_ref))
    pert = mm(a, w4_ref, b4_ref)

    # residual: adversarial_encoding = encoding + 0.1 * perturbation
    # TODO(synk): for H < 128 and large M, relayout (x + 0.1*pert) to a
    # (TM * H // 128, 128) lane-packed slab (matching a wrapper-side reshape of
    # the output) to replace the masked vst.msk store with lane-dense stores.
    out_ref[...] = (x + 0.1 * pert).astype(out_ref.dtype)


def _pick_block_rows(M, H, itemsize):
    """Row-block policy: one block for small slabs, ~<=512-row blocks for big ones."""
    # Tiny problems: per-grid-step overhead (~0.35 us) dwarfs compute -> never split.
    if M <= 512 or M * H * itemsize <= (1 << 20):
        return M
    # Cap block rows so grid depth >= ~4 (steady-state pipelining) and the f32
    # (rows, 2H) intermediate stays modest.
    target = 512
    while target > 8 and target * 2 * H * 4 > (4 << 20):
        target //= 2
    for br in range(target, 7, -8):          # multiples of 8 (sublane alignment)
        if M % br == 0:
            return br
    return M


def adversarial_generator(encoding, params, targets=None, context=None, *,
                          block_rows=None, mxu_dtype=None, core_parallel=False):
    """encoding: (..., H). `targets` / `context` are ignored (as in the reference)."""
    del targets, context
    w1, b1, w2, b2, gamma, beta, w3, b3, w4, b4 = params
    weights = (w1, b1, w2, b2, gamma, beta, w3, b3, w4, b4)

    H = encoding.shape[-1]
    lead = encoding.shape[:-1]
    M = 1
    for s in lead:
        M *= int(s)
    x2d = encoding.reshape(M, H)             # free reshape (no data movement)

    if block_rows is None:
        block_rows = _pick_block_rows(M, H, encoding.dtype.itemsize)
    assert M % block_rows == 0, "row-block size must divide prod(leading dims)"
    grid_steps = M // block_rows

    # Grid-invariant resident weights: single-buffer them only when they are big
    # enough to matter (halves weight VMEM at large H; no-op at H=32).
    weight_bytes = sum(int(a.size) * a.dtype.itemsize for a in weights)
    single_buffer_weights = weight_bytes > (1 << 20)

    def full_spec(a):
        if single_buffer_weights:
            return pl.BlockSpec(a.shape, lambda *_: (0,) * a.ndim,
                                pipeline_mode=pl.Buffered(1))
        return pl.BlockSpec(a.shape, lambda *_: (0,) * a.ndim)

    # Dimension semantics: "arbitrary" unless we genuinely want v7x 2-TC sharding
    # (opt-in, and only sensible when each block carries multiple us of work).
    if grid_steps > 1 and core_parallel:
        dim_sem = (pltpu.CORE_PARALLEL,)
    else:
        dim_sem = ("arbitrary",)

    # Explicit VMEM budget only when it exceeds the smallest default scoped limit;
    # cap at v7x's 64 MiB physical VMEM.
    io_bytes = 2 * block_rows * H * 2 * encoding.dtype.itemsize      # x + out, 2-buf
    inter_bytes = 4 * block_rows * (2 * H) * 4                       # f32 live-value headroom
    need = (1 if single_buffer_weights else 2) * weight_bytes + io_bytes + inter_bytes
    cp_kwargs = dict(dimension_semantics=dim_sem)
    if need > (16 << 20):
        cp_kwargs["vmem_limit_bytes"] = min(int(need * 3 // 2), 64 << 20)

    kernel = functools.partial(_adv_gen_kernel, mxu_dtype=mxu_dtype)

    out = pl.pallas_call(
        kernel,
        out_shape=jax.ShapeDtypeStruct((M, H), encoding.dtype),
        grid_spec=pltpu.PrefetchScalarGridSpec(
            num_scalar_prefetch=0,
            grid=(grid_steps,),
            in_specs=[pl.BlockSpec((block_rows, H), lambda i: (i, 0))]
                     + [full_spec(a) for a in weights],
            out_specs=pl.BlockSpec((block_rows, H), lambda i: (i, 0)),
        ),
        compiler_params=pltpu.CompilerParams(**cp_kwargs),
    )(x2d, *weights)

    return out.reshape(*lead, H)


def init_params(key, hidden):
    """Deterministic synthetic parameters (shapes mirror the PyTorch module).

    Linear weights are stored pre-transposed to (in, out) so the kernel does
    x @ W + b; biases as (1, D).  LayerNorm affine uses the PyTorch default init.
    """
    ks = jax.random.split(key, 8)
    std = 0.02
    w1 = jax.random.normal(ks[0], (hidden, 2 * hidden), jnp.float32) * std
    b1 = jax.random.normal(ks[1], (1, 2 * hidden), jnp.float32) * std
    w2 = jax.random.normal(ks[2], (2 * hidden, hidden), jnp.float32) * std
    b2 = jax.random.normal(ks[3], (1, hidden), jnp.float32) * std
    gamma = jnp.ones((1, hidden), jnp.float32)
    beta = jnp.zeros((1, hidden), jnp.float32)
    w3 = jax.random.normal(ks[4], (hidden, hidden), jnp.float32) * std
    b3 = jax.random.normal(ks[5], (1, hidden), jnp.float32) * std
    w4 = jax.random.normal(ks[6], (hidden, hidden), jnp.float32) * std
    b4 = jax.random.normal(ks[7], (1, hidden), jnp.float32) * std
    return (w1, b1, w2, b2, gamma, beta, w3, b3, w4, b4)


def _reference(x2d, params):
    """Pure-JAX reference of the module forward (eval mode)."""
    w1, b1, w2, b2, gamma, beta, w3, b3, w4, b4 = params
    h = jnp.maximum(x2d @ w1 + b1, 0.0)
    e = h @ w2 + b2
    mu = jnp.mean(e, axis=-1, keepdims=True)
    var = jnp.mean((e - mu) ** 2, axis=-1, keepdims=True)
    enc = (e - mu) / jnp.sqrt(var + LN_EPS) * gamma + beta
    a = jnp.tanh(enc @ w3 + b3)
    pert = a @ w4 + b4
    return x2d + 0.1 * pert


if __name__ == "__main__":
    BATCH, SEQ, HIDDEN = 2, 8, 32
    key = jax.random.PRNGKey(0)
    k_x, k_t, k_c, k_p = jax.random.split(key, 4)
    encoding = jax.random.normal(k_x, (BATCH, SEQ, HIDDEN), jnp.float32)
    targets = jax.random.normal(k_t, (BATCH, SEQ, HIDDEN), jnp.float32)   # unused
    context = jax.random.normal(k_c, (BATCH, SEQ, HIDDEN), jnp.float32)   # unused
    params = init_params(k_p, HIDDEN)

    out = adversarial_generator(encoding, params, targets, context)
    out = jax.block_until_ready(out)

    ref = _reference(encoding.reshape(-1, HIDDEN), params).reshape(encoding.shape)
    assert out.shape == encoding.shape
    assert bool(jnp.all(jnp.isfinite(out)))
    assert bool(jnp.allclose(out, ref, rtol=1e-5, atol=1e-5))
    print("KERNEL_OK")
</pallas_src>

<mosaic_0001>
module attributes {stable_mosaic.version = 11 : i64} {
  func.func @_adv_gen_kernel(%arg0: i32, %arg1: memref<16x32xf32, #tpu.memory_space<vmem>>, %arg2: memref<32x64xf32, #tpu.memory_space<vmem>>, %arg3: memref<1x64xf32, #tpu.memory_space<vmem>>, %arg4: memref<64x32xf32, #tpu.memory_space<vmem>>, %arg5: memref<1x32xf32, #tpu.memory_space<vmem>>, %arg6: memref<1x32xf32, #tpu.memory_space<vmem>>, %arg7: memref<1x32xf32, #tpu.memory_space<vmem>>, %arg8: memref<32x32xf32, #tpu.memory_space<vmem>>, %arg9: memref<1x32xf32, #tpu.memory_space<vmem>>, %arg10: memref<32x32xf32, #tpu.memory_space<vmem>>, %arg11: memref<1x32xf32, #tpu.memory_space<vmem>>, %arg12: memref<16x32xf32, #tpu.memory_space<vmem>>) attributes {dimension_semantics = [#tpu.dimension_semantics<arbitrary>], iteration_bounds = array<i64: 1>, scalar_prefetch = 0 : i64, scratch_operands = 0 : i64, tpu.core_type = #tpu.core_type<tc>, window_params = [{transform_indices = @transform_0, window_bounds = array<i64: 16, 32>}, {pipeline_mode = #tpu.pipeline_mode<synchronous>, transform_indices = @transform_1, window_bounds = array<i64: 32, 64>}, {pipeline_mode = #tpu.pipeline_mode<synchronous>, transform_indices = @transform_2, window_bounds = array<i64: 1, 64>}, {pipeline_mode = #tpu.pipeline_mode<synchronous>, transform_indices = @transform_3, window_bounds = array<i64: 64, 32>}, {pipeline_mode = #tpu.pipeline_mode<synchronous>, transform_indices = @transform_4, window_bounds = array<i64: 1, 32>}, {pipeline_mode = #tpu.pipeline_mode<synchronous>, transform_indices = @transform_5, window_bounds = array<i64: 1, 32>}, {pipeline_mode = #tpu.pipeline_mode<synchronous>, transform_indices = @transform_6, window_bounds = array<i64: 1, 32>}, {pipeline_mode = #tpu.pipeline_mode<synchronous>, transform_indices = @transform_7, window_bounds = array<i64: 32, 32>}, {pipeline_mode = #tpu.pipeline_mode<synchronous>, transform_indices = @transform_8, window_bounds = array<i64: 1, 32>}, {pipeline_mode = #tpu.pipeline_mode<synchronous>, transform_indices = @transform_9, window_bounds = array<i64: 32, 32>}, {pipeline_mode = #tpu.pipeline_mode<synchronous>, transform_indices = @transform_10, window_bounds = array<i64: 1, 32>}, {transform_indices = @transform_11, window_bounds = array<i64: 16, 32>}]} {
    %c0 = arith.constant 0 : index
    %c0_0 = arith.constant 0 : index
    %0 = vector.load %arg1[%c0, %c0_0] : memref<16x32xf32, #tpu.memory_space<vmem>>, vector<16x32xf32>
    %c0_1 = arith.constant 0 : index
    %c0_2 = arith.constant 0 : index
    %1 = vector.load %arg2[%c0_1, %c0_2] : memref<32x64xf32, #tpu.memory_space<vmem>>, vector<32x64xf32>
    %cst = arith.constant dense<0.000000e+00> : vector<16x64xf32>
    %2 = tpu.matmul %0, %1, %cst {dimension_numbers = #tpu.dot_dimension_numbers<[1], [0], [0], [1], [0, 0, 1, 1], [], []>} : vector<16x32xf32>, vector<32x64xf32>, vector<16x64xf32> -> vector<16x64xf32>
    %c0_3 = arith.constant 0 : index
    %c0_4 = arith.constant 0 : index
    %3 = vector.load %arg3[%c0_3, %c0_4] : memref<1x64xf32, #tpu.memory_space<vmem>>, vector<1x64xf32>
    %4 = vector.broadcast %3 : vector<1x64xf32> to vector<16x64xf32>
    %5 = arith.addf %2, %4 : vector<16x64xf32>
    %cst_5 = arith.constant 0.000000e+00 : f32
    %6 = vector.broadcast %cst_5 : f32 to vector<16x64xf32>
    %7 = arith.maximumf %5, %6 : vector<16x64xf32>
    %c0_6 = arith.constant 0 : index
    %c0_7 = arith.constant 0 : index
    %8 = vector.load %arg4[%c0_6, %c0_7] : memref<64x32xf32, #tpu.memory_space<vmem>>, vector<64x32xf32>
    %cst_8 = arith.constant dense<0.000000e+00> : vector<16x32xf32>
    %9 = tpu.matmul %7, %8, %cst_8 {dimension_numbers = #tpu.dot_dimension_numbers<[1], [0], [0], [1], [0, 0, 1, 1], [], []>} : vector<16x64xf32>, vector<64x32xf32>, vector<16x32xf32> -> vector<16x32xf32>
    %c0_9 = arith.constant 0 : index
    %c0_10 = arith.constant 0 : index
    %10 = vector.load %arg5[%c0_9, %c0_10] : memref<1x32xf32, #tpu.memory_space<vmem>>, vector<1x32xf32>
    %11 = vector.broadcast %10 : vector<1x32xf32> to vector<16x32xf32>
    %12 = arith.addf %9, %11 : vector<16x32xf32>
    %cst_11 = arith.constant dense<0.000000e+00> : vector<16xf32>
    %13 = vector.multi_reduction <add>, %12, %cst_11 [1] : vector<16x32xf32> to vector<16xf32>
    %14 = vector.shape_cast %13 : vector<16xf32> to vector<16x1xf32>
    %cst_12 = arith.constant 3.200000e+01 : f32
    %15 = vector.broadcast %cst_12 : f32 to vector<16x1xf32>
    %16 = arith.divf %14, %15 : vector<16x1xf32>
    %17 = arith.mulf %12, %12 : vector<16x32xf32>
    %cst_13 = arith.constant dense<0.000000e+00> : vector<16xf32>
    %18 = vector.multi_reduction <add>, %17, %cst_13 [1] : vector<16x32xf32> to vector<16xf32>
    %19 = vector.shape_cast %18 : vector<16xf32> to vector<16x1xf32>
    %cst_14 = arith.constant 3.200000e+01 : f32
    %20 = vector.broadcast %cst_14 : f32 to vector<16x1xf32>
    %21 = arith.divf %19, %20 : vector<16x1xf32>
    %22 = arith.mulf %16, %16 : vector<16x1xf32>
    %23 = arith.subf %21, %22 : vector<16x1xf32>
    %24 = vector.broadcast %16 : vector<16x1xf32> to vector<16x32xf32>
    %25 = arith.subf %12, %24 : vector<16x32xf32>
    %cst_15 = arith.constant 9.99999974E-6 : f32
    %26 = vector.broadcast %cst_15 : f32 to vector<16x1xf32>
    %27 = arith.addf %23, %26 : vector<16x1xf32>
    %28 = math.rsqrt %27 : vector<16x1xf32>
    %29 = vector.broadcast %28 : vector<16x1xf32> to vector<16x32xf32>
    %30 = arith.mulf %25, %29 : vector<16x32xf32>
    %c0_16 = arith.constant 0 : index
    %c0_17 = arith.constant 0 : index
    %31 = vector.load %arg6[%c0_16, %c0_17] : memref<1x32xf32, #tpu.memory_space<vmem>>, vector<1x32xf32>
    %32 = vector.broadcast %31 : vector<1x32xf32> to vector<16x32xf32>
    %33 = arith.mulf %30, %32 : vector<16x32xf32>
    %c0_18 = arith.constant 0 : index
    %c0_19 = arith.constant 0 : index
    %34 = vector.load %arg7[%c0_18, %c0_19] : memref<1x32xf32, #tpu.memory_space<vmem>>, vector<1x32xf32>
    %35 = vector.broadcast %34 : vector<1x32xf32> to vector<16x32xf32>
    %36 = arith.addf %33, %35 : vector<16x32xf32>
    %c0_20 = arith.constant 0 : index
    %c0_21 = arith.constant 0 : index
    %37 = vector.load %arg8[%c0_20, %c0_21] : memref<32x32xf32, #tpu.memory_space<vmem>>, vector<32x32xf32>
    %cst_22 = arith.constant dense<0.000000e+00> : vector<16x32xf32>
    %38 = tpu.matmul %36, %37, %cst_22 {dimension_numbers = #tpu.dot_dimension_numbers<[1], [0], [0], [1], [0, 0, 1, 1], [], []>} : vector<16x32xf32>, vector<32x32xf32>, vector<16x32xf32> -> vector<16x32xf32>
    %c0_23 = arith.constant 0 : index
    %c0_24 = arith.constant 0 : index
    %39 = vector.load %arg9[%c0_23, %c0_24] : memref<1x32xf32, #tpu.memory_space<vmem>>, vector<1x32xf32>
    %40 = vector.broadcast %39 : vector<1x32xf32> to vector<16x32xf32>
    %41 = arith.addf %38, %40 : vector<16x32xf32>
    %42 = math.tanh %41 : vector<16x32xf32>
    %c0_25 = arith.constant 0 : index
    %c0_26 = arith.constant 0 : index
    %43 = vector.load %arg10[%c0_25, %c0_26] : memref<32x32xf32, #tpu.memory_space<vmem>>, vector<32x32xf32>
    %cst_27 = arith.constant dense<0.000000e+00> : vector<16x32xf32>
    %44 = tpu.matmul %42, %43, %cst_27 {dimension_numbers = #tpu.dot_dimension_numbers<[1], [0], [0], [1], [0, 0, 1, 1], [], []>} : vector<16x32xf32>, vector<32x32xf32>, vector<16x32xf32> -> vector<16x32xf32>
    %c0_28 = arith.constant 0 : index
    %c0_29 = arith.constant 0 : index
    %45 = vector.load %arg11[%c0_28, %c0_29] : memref<1x32xf32, #tpu.memory_space<vmem>>, vector<1x32xf32>
    %46 = vector.broadcast %45 : vector<1x32xf32> to vector<16x32xf32>
    %47 = arith.addf %44, %46 : vector<16x32xf32>
    %cst_30 = arith.constant 1.000000e-01 : f32
    %48 = vector.broadcast %cst_30 : f32 to vector<16x32xf32>
    %49 = arith.mulf %48, %47 : vector<16x32xf32>
    %50 = arith.addf %0, %49 : vector<16x32xf32>
    %c0_31 = arith.constant 0 : index
    %c0_32 = arith.constant 0 : index
    %51 = vector.load %arg12[%c0_31, %c0_32] : memref<16x32xf32, #tpu.memory_space<vmem>>, vector<16x32xf32>
    tpu.vector_store %arg12[%c0_31, %c0_32], %50 {strides = array<i32>} : memref<16x32xf32, #tpu.memory_space<vmem>>, vector<16x32xf32>,
    return
  }
  func.func @transform_0(%arg0: i32) -> (i32, i32) {
    %c0_i32 = arith.constant 0 : i32
    %c0_i32_0 = arith.constant 0 : i32
    return %arg0, %c0_i32 : i32, i32
  }
  func.func @transform_1(%arg0: i32) -> (i32, i32) {
    %c0_i32 = arith.constant 0 : i32
    %c0_i32_0 = arith.constant 0 : i32
    %c0_i32_1 = arith.constant 0 : i32
    return %c0_i32, %c0_i32_0 : i32, i32
  }
  func.func @transform_2(%arg0: i32) -> (i32, i32) {
    %c0_i32 = arith.constant 0 : i32
    %c0_i32_0 = arith.constant 0 : i32
    %c0_i32_1 = arith.constant 0 : i32
    return %c0_i32, %c0_i32_0 : i32, i32
  }
  func.func @transform_3(%arg0: i32) -> (i32, i32) {
    %c0_i32 = arith.constant 0 : i32
    %c0_i32_0 = arith.constant 0 : i32
    %c0_i32_1 = arith.constant 0 : i32
    return %c0_i32, %c0_i32_0 : i32, i32
  }
  func.func @transform_4(%arg0: i32) -> (i32, i32) {
    %c0_i32 = arith.constant 0 : i32
    %c0_i32_0 = arith.constant 0 : i32
    %c0_i32_1 = arith.constant 0 : i32
    return %c0_i32, %c0_i32_0 : i32, i32
  }
  func.func @transform_5(%arg0: i32) -> (i32, i32) {
    %c0_i32 = arith.constant 0 : i32
    %c0_i32_0 = arith.constant 0 : i32
    %c0_i32_1 = arith.constant 0 : i32
    return %c0_i32, %c0_i32_0 : i32, i32
  }
  func.func @transform_6(%arg0: i32) -> (i32, i32) {
    %c0_i32 = arith.constant 0 : i32
    %c0_i32_0 = arith.constant 0 : i32
    %c0_i32_1 = arith.constant 0 : i32
    return %c0_i32, %c0_i32_0 : i32, i32
  }
  func.func @transform_7(%arg0: i32) -> (i32, i32) {
    %c0_i32 = arith.constant 0 : i32
    %c0_i32_0 = arith.constant 0 : i32
    %c0_i32_1 = arith.constant 0 : i32
    return %c0_i32, %c0_i32_0 : i32, i32
  }
  func.func @transform_8(%arg0: i32) -> (i32, i32) {
    %c0_i32 = arith.constant 0 : i32
    %c0_i32_0 = arith.constant 0 : i32
    %c0_i32_1 = arith.constant 0 : i32
    return %c0_i32, %c0_i32_0 : i32, i32
  }
  func.func @transform_9(%arg0: i32) -> (i32, i32) {
    %c0_i32 = arith.constant 0 : i32
    %c0_i32_0 = arith.constant 0 : i32
    %c0_i32_1 = arith.constant 0 : i32
    return %c0_i32, %c0_i32_0 : i32, i32
  }
  func.func @transform_10(%arg0: i32) -> (i32, i32) {
    %c0_i32 = arith.constant 0 : i32
    %c0_i32_0 = arith.constant 0 : i32
    %c0_i32_1 = arith.constant 0 : i32
    return %c0_i32, %c0_i32_0 : i32, i32
  }
  func.func @transform_11(%arg0: i32) -> (i32, i32) {
    %c0_i32 = arith.constant 0 : i32
    %c0_i32_0 = arith.constant 0 : i32
    return %arg0, %c0_i32 : i32, i32
  }
}

</mosaic_0001>

<bundles_post_ra>
// kernel: tpu_custom_call.1
= control target key start
LH: loop header
LB: loop body
LE: loop exit
PB: predicated region body
PF: predicated region fallthrough
CT: control target
= control target key end

     0   :  { %16 = vsyncpa [#allocation3], 0  ;;  %s891_s0 = inlined_call_operand.hbm [shape: f32[16,32], index: 0, kind: input, shape index: {}]   ;;  %s892_s1 = inlined_call_operand.vmem [shape: f32[32,64], index: 1, kind: input, shape index: {}]   ;;  %s893_s2 = inlined_call_operand.vmem [shape: f32[1,64], index: 2, kind: input, shape index: {}]   ;;  %s894_s3 = inlined_call_operand.vmem [shape: f32[64,32], index: 3, kind: input, shape index: {}]   ;;  %s895_s4 = inlined_call_operand.vmem [shape: f32[1,32], index: 4, kind: input, shape index: {}]   ;;  %s896_s5 = inlined_call_operand.vmem [shape: f32[1,32], index: 5, kind: input, shape index: {}]   ;;  %s897_s6 = inlined_call_operand.vmem [shape: f32[1,32], index: 6, kind: input, shape index: {}]   ;;  %s898_s7 = inlined_call_operand.vmem [shape: f32[32,32], index: 7, kind: input, shape index: {}]   ;;  %s899_s8 = inlined_call_operand.vmem [shape: f32[1,32], index: 8, kind: input, shape index: {}]   ;;  %s900_s9 = inlined_call_operand.vmem [shape: f32[32,32], index: 9, kind: input, shape index: {}]   ;;  %s901_s10 = inlined_call_operand.vmem [shape: f32[1,32], index: 10, kind: input, shape index: {}]   ;;  %s902_s11 = inlined_call_operand.hbm [shape: f32[16,32], index: 11, kind: output, shape index: {}]  }
   0x1   :  { %17 = vsyncpa [#allocation4], 0  ;;  %s699_s17 = smov [#allocation2]   ;;  %s651_s21 = scalar_lea.hbm %s891_s0, 256 }
   0x2   :  { %s23_s18 = sshll.u32 %s699_s17, 4  ;;  %p652_p0 = scmp.ne.s32.totalorder %s891_s0, %s651_s21  ;;  %s24_s18 = int_to_ptr.vmem [resolvable:$true] %s23_s18 }
   0x3   :  { %p655_p1 = scmp.lt.u32.totalorder %s651_s21, %s891_s0 }
   0x5   :  { %p657_p2 = pnand %p655_p1, %p652_p0 }
   0x7   :  { %660 = shalt.err (!%p657_p2)
}
   0x8   :  { %s661_s26 = scalar_lea.vmem %s24_s18, 256  ;;  %p666_p4 = scmp.lt.s32.totalorder %s24_s18, %s24_s18 }
   0x9   :  { %p662_p3 = scmp.ne.s32.totalorder %s24_s18, %s661_s26  ;;  %p667_p5 = scmp.lt.s32.totalorder %s661_s26, %s661_s26 }
   0xb   :  { %p668_p6 = por %p667_p5, %p666_p4 }
   0xd   :  { %p669_p7 = pnand %p668_p6, %p662_p3 }
   0xf   :  { %672 = shalt.err (!%p669_p7)
}
  0x10   :  { %s700_s27 = smov 128   ;;  %s701_s28 = smov 8  }
  0x11   :  { %29 = dma.hbm_to_vmem [thread:$0]  %s891_s0, 256, %s24_s18, [#allocation3], %s700_s27, %s700_s27, %s701_s28  }
  0x12   :  { %695 = dma.done.wait [#allocation3], 256  }
  0x13   :  { %696 = vsyncadd [#allocation3], 4294967040  ;;  %vm66_vm0 = vcmask 261120   ;;  %v55_v0 = vld [vmem:[%s892_s1] sm:$0xff]  ;;  %v56_v1 = vld [vmem:[%s892_s1 + $0x8] sm:$0xff]  ;;  %vm165_vm1 = vcmask 523264  }
  0x14   :  { %v57_v2 = vld [vmem:[%s892_s1 + $0x10] sm:$0xff]  ;;  %v599_v3 = vpack.c.bf16 %v56_v1, %v55_v0  ;;  %v58_v4 = vld [vmem:[%s892_s1 + $0x18] sm:$0xff]  ;;  %v790_v5 = vld [vmem:[#allocation2] sm:$0xff] }
  0x15   :  { %v603_v6 = vpack.c.bf16 %v58_v4, %v57_v2  ;;  %555 = vmatprep.mubr.msk.f32.mxu0 %vm66_vm0, %v790_v5  ;;  %v150_v7 = vld [vmem:[%s894_s3] sm:$0xff]  ;;  %v151_v8 = vld [vmem:[%s894_s3 + $0x8] sm:$0xff]  ;;  %v152_v9 = vld [vmem:[%s894_s3 + $0x10] sm:$0xff] }
  0x16   :  { %600 = vmatprep.subr.bf16.mxu0 %v599_v3  ;;  %v607_v10 = vpack.c.bf16 %v151_v8, %v150_v7  ;;  %v153_v11 = vld [vmem:[%s894_s3 + $0x18] sm:$0xff]  ;;  %v154_v13 = vld [vmem:[%s894_s3 + $0x20] sm:$0xff]  ;;  %v155_v14 = vld [vmem:[%s894_s3 + $0x28] sm:$0xff] }
  0x17   :  { %602 = vmatpush3.bf16.msra.mxu0 %v599_v3  ;;  %v611_v12 = vpack.c.bf16 %v153_v11, %v152_v9  ;;  %v615_v15 = vpack.c.bf16 %v155_v14, %v154_v13  ;;  %v812_v16 = vld [vmem:[#allocation2 + $0x8] sm:$0xff]  ;;  %v156_v17 = vld [vmem:[%s894_s3 + $0x30] sm:$0xff]  ;;  %v157_v18 = vld [vmem:[%s894_s3 + $0x38] sm:$0xff] }
  0x18   :  { %604 = vmatprep.subr.bf16.mxu0 %v603_v6  ;;  %608 = vmatprep.subr.bf16.mxu1 %v607_v10  ;;  %v619_v19 = vpack.c.bf16 %v157_v18, %v156_v17  ;;  %v505_v20 = vld [vmem:[%s893_s2] ss:$0 sm:$0xff]  ;;  %v297_v39 = vld [vmem:[%s898_s7 + $0x8] sm:$0xff]  ;;  %v298_v40 = vld [vmem:[%s898_s7 + $0x10] sm:$0xff] }
  0x19   :  { %610 = vmatpush3.bf16.msra.mxu1 %v607_v10  ;;  %v508_v27 = vld [vmem:[%s895_s4] ss:$0 sm:$0xff]  ;;  %v299_v42 = vld [vmem:[%s898_s7 + $0x18] sm:$0xff]  ;;  %v391_v8 = vld [vmem:[%s900_s9 + $0x8] sm:$0xff] }
  0x1a   :  { %612 = vmatprep.subr.bf16.mxu1 %v611_v12  ;;  %v296_v38 = vld [vmem:[%s898_s7] sm:$0xff]  ;;  %v627_v43 = vpack.c.bf16 %v299_v42, %v298_v40  ;;  %v392_v9 = vld [vmem:[%s900_s9 + $0x10] sm:$0xff]  ;;  %v393_v11 = vld [vmem:[%s900_s9 + $0x18] sm:$0xff] }
  0x1b   :  { %606 = vmatpush3.bf16.msra.mxu0 %v603_v6  ;;  %v623_v41 = vpack.c.bf16 %v297_v39, %v296_v38  ;;  %v511_v60 = vld [vmem:[%s896_s5] ss:$0 sm:$0xff] }
  0x1c   :  { %v512_v62 = vld [vmem:[%s897_s6] ss:$0 sm:$0xff] }
  0x1d   :  { %614 = vmatpush3.bf16.msra.mxu1 %v611_v12  ;;  %624 = vmatprep.subr.bf16.mxu0 %v623_v41  ;;  %v390_v7 = vld [vmem:[%s900_s9] sm:$0xff]  ;;  %v635_v12 = vpack.c.bf16 %v393_v11, %v392_v9 }
  0x1e   :  { %556 = vmatmul.mubr.msk.f32.vlgmr.msra.gmra.mrb[0].mxu0 %vm66_vm0, %v812_v16  ;;  %616 = vmatprep.subr.bf16.mxu1 %v615_v15  ;;  %v631_v10 = vpack.c.bf16 %v391_v8, %v390_v7  ;;  %v513_v13 = vld [vmem:[%s899_s8] ss:$0 sm:$0xff]  ;;  %s702_s8 = smov [#allocation5]  }
  0x1f   :  { %626 = vmatpush3.bf16.msra.mxu0 %v623_v41  ;;  %s493_s20 = sshll.u32 %s702_s8, 4  ;;  %s494_s20 = int_to_ptr.vmem [resolvable:$true] %s493_s20 }
  0x20   :  { %628 = vmatprep.subr.bf16.mxu0 %v627_v43  ;;  %s673_s0 = scalar_lea.vmem %s494_s20, 256  ;;  %p678_p9 = scmp.lt.s32.totalorder %s494_s20, %s494_s20 }
  0x21   :  { %618 = vmatpush3.bf16.msra.mxu1 %v615_v15  ;;  %p674_p8 = scmp.ne.s32.totalorder %s494_s20, %s673_s0  ;;  %p679_p10 = scmp.lt.s32.totalorder %s673_s0, %s673_s0 }
  0x22   :  { %620 = vmatprep.subr.bf16.mxu1 %v619_v19 }
  0x23   :  { %630 = vmatpush3.bf16.msra.mxu0 %v627_v43  ;;  %p680_p11 = por %p679_p10, %p678_p9 }
  0x24   :  { %632 = vmatprep.subr.bf16.mxu0 %v631_v10 }
  0x25   :  { %622 = vmatpush3.bf16.msra.mxu1 %v619_v19  ;;  %p681_p12 = pnand %p680_p11, %p674_p8 }
  0xf1   :  { %v557_v21 = vpop.f32.mrb[0].mxu0 }
  0xf2   :  { %v145_v22 = vadd.f32 %v557_v21, %v505_v20  ;;  %v139_v23 = vpop.f32.mrb[1].mxu0  ;;  %v516_v21 = vld [vmem:[%s901_s10] ss:$0 sm:$0xff] }
  0xf3   :  { %v140_v24 = vadd.f32 %v505_v20, %v139_v23 }
  0xf4   :  { %v149_v26 = vmax.f32 %v145_v22, 0.0 }
  0xf5   :  { %v148_v25 = vmax.f32 %v140_v24, 0.0 }
  0xf7   :  { %574 = vmatprep.mubr.msk.f32.mxu1 %vm165_vm1, %v148_v25 }
  0xf8   :  { %575 = vmatmul.mubr.msk.f32.vlgmr.msra.gmra.mrb[0].mxu1 %vm165_vm1, %v149_v26 }
 0x1cb   :  { %v576_v28 = vpop.f32.mrb[0].mxu1 }
 0x1cc   :  { %v238_v29 = vpop.f32.mrb[1].mxu1  ;;  %v244_v30 = vadd.f32 %v576_v28, %v508_v27 }
 0x1cd   :  { %v239_v31 = vadd.f32 %v508_v27, %v238_v29 }
 0x1ce   :  { %v257_v35 = vmul.f32 %v244_v30, %v244_v30  ;;  %v250_v36 = vsel %vm66_vm0, %v244_v30, 0.0 }
 0x1cf   :  { %v247_v32 = vsel %vm66_vm0, %v239_v31, 0.0  ;;  %v256_v33 = vmul.f32 %v239_v31, %v239_v31 }
 0x1d0   :  { %248 = vadd.xlane.f32.xlu0 %v247_v32  ;;  %v261_v37 = vsel %vm66_vm0, %v257_v35, 0.0 }
 0x1d1   :  { %v258_v34 = vsel %vm66_vm0, %v256_v33, 0.0 }
 0x1d2   :  { %259 = vadd.xlane.f32.xlu1 %v258_v34 }
 0x1d4   :  { %251 = vadd.xlane.f32.xlu0 %v250_v36 }
 0x1d6   :  { %262 = vadd.xlane.f32.xlu1 %v261_v37 }
 0x25d   :  { %v249_v44 = vpop.xlane.xlu0 %248 }
 0x25e   :  { %v254_v45 = vmul.f32 0.03125, %v249_v44 }
 0x25f   :  { %v260_v46 = vpop.xlane.xlu1 %259 }
 0x260   :  { %v266_v47 = vmul.f32 %v254_v45, %v254_v45  ;;  %v264_v48 = vmul.f32 0.03125, %v260_v46  ;;  %v270_v58 = vsub.f32 %v239_v31, %v254_v45 }
 0x261   :  { %v252_v49 = vpop.xlane.xlu0 %251 }
 0x262   :  { %v268_v50 = vsub.f32 %v264_v48, %v266_v47  ;;  %v255_v51 = vmul.f32 0.03125, %v252_v49 }
 0x263   :  { %v263_v52 = vpop.xlane.xlu1 %262 }
 0x264   :  { %v272_v53 = vadd.f32 1e-05, %v268_v50  ;;  %v267_v54 = vmul.f32 %v255_v51, %v255_v51  ;;  %v265_v55 = vmul.f32 0.03125, %v263_v52  ;;  %v271_v63 = vsub.f32 %v244_v30, %v255_v51 }
 0x266   :  { %643 = vrsqrt.f32 %v272_v53  ;;  %v269_v56 = vsub.f32 %v265_v55, %v267_v54 }
 0x268   :  { %v273_v57 = vadd.f32 1e-05, %v269_v56 }
 0x26a   :  { %645 = vrsqrt.f32 %v273_v57 }
 0x270   :  { %v644_v59 = vpop.eup %643 }
 0x271   :  { %v276_v61 = vmul.f32 %v644_v59, %v270_v58 }
 0x273   :  { %v285_v0 = vmul.f32 %v511_v60, %v276_v61 }
 0x274   :  { %v646_v1 = vpop.eup %645 }
 0x275   :  { %v277_v2 = vmul.f32 %v646_v1, %v271_v63  ;;  %v294_v3 = vadd.f32 %v512_v62, %v285_v0 }
 0x277   :  { %v286_v4 = vmul.f32 %v511_v60, %v277_v2  ;;  %585 = vmatprep.mubr.msk.f32.mxu0 %vm66_vm0, %v294_v3 }
 0x279   :  { %v295_v6 = vadd.f32 %v512_v62, %v286_v4 }
 0x27b   :  { %586 = vmatmul.mubr.msk.f32.vlgmr.msra.gmra.mrb[2].mxu0 %vm66_vm0, %v295_v6 }
 0x27c   :  { %634 = vmatpush3.bf16.msra.mxu0 %v631_v10 }
 0x27d   :  { %636 = vmatprep.subr.bf16.mxu0 %v635_v12 }
 0x280   :  { %638 = vmatpush3.bf16.msra.mxu0 %v635_v12 }
 0x34e   :  { %v587_v14 = vpop.f32.mrb[2].mxu0 }
 0x34f   :  { %v385_v15 = vadd.f32 %v587_v14, %v513_v13  ;;  %v379_v17 = vpop.f32.mrb[3].mxu0 }
 0x350   :  { %v380_v18 = vadd.f32 %v513_v13, %v379_v17 }
 0x352   :  { %647 = vtanh.f32 %v380_v18 }
 0x353   :  { %649 = vtanh.f32 %v385_v15 }
 0x35c   :  { %v648_v19 = vpop.eup %647 }
 0x35d   :  { %v650_v20 = vpop.eup %649  ;;  %596 = vmatprep.mubr.msk.f32.mxu0 %vm66_vm0, %v648_v19 }
 0x35e   :  { %597 = vmatmul.mubr.msk.f32.vlgmr.msra.gmra.mrb[4].mxu0 %vm66_vm0, %v650_v20 }
 0x431   :  { %v598_v22 = vpop.f32.mrb[4].mxu0 }
 0x432   :  { %v479_v23 = vadd.f32 %v598_v22, %v516_v21  ;;  %v473_v24 = vpop.f32.mrb[5].mxu0 }
 0x433   :  { %v474_v25 = vadd.f32 %v516_v21, %v473_v24 }
 0x434   :  { %v483_v26 = vmul.f32 0.1, %v479_v23 }
 0x435   :  { %v482_v27 = vmul.f32 0.1, %v474_v25 }
 0x436   :  { %v485_v28 = vadd.f32 %v483_v26, %v812_v16 }
 0x437   :  { %v484_v29 = vadd.f32 %v482_v27, %v790_v5 }
 0x438   :  { %487 = vst.msk [vmem:[#allocation5 + $0x8] sm:$0xff] %vm66_vm0, %v485_v28 }
 0x439   :  { %486 = vst.msk [vmem:[#allocation5] sm:$0xff] %vm66_vm0, %v484_v29 }
 0x43a   :  { %684 = shalt.err (!%p681_p12)
}
 0x43b   :  { %s685_s3 = scalar_lea.hbm %s902_s11, 256 }
 0x43c   :  { %p686_p13 = scmp.ne.s32.totalorder %s902_s11, %s685_s3  ;;  %p689_p0 = scmp.lt.u32.totalorder %s685_s3, %s902_s11 }
 0x43e   :  { %p691_p1 = pnand %p689_p0, %p686_p13 }
 0x440   :  { %694 = shalt.err (!%p691_p1)
}
 0x441   :  { %499 = dma.vmem_to_hbm [thread:$0]  %s494_s20, 256, %s902_s11, [#allocation4], %s700_s27, %s700_s27, %s701_s28  }
 0x442   :  { %697 = dma.done.wait [#allocation4], 256  }
 0x443   :  { %698 = vsyncadd [#allocation4], 4294967040 }
 0x444   :  { %503 = vsyncpa [#allocation3], 1 }
 0x445   :  { %504 = vsyncpa [#allocation4], 1 }

</bundles_post_ra>
